<compile_context>
chip_gen: v7x
topology: tpu7x:2x2x1
jax: 0.10.0
libtpu: 0.0.40
codegen_flags: <defaults>
</compile_context>

<pallas_src>
import jax
import jax.numpy as jnp
from jax.experimental import pallas as pl
from jax.experimental.pallas import tpu as pltpu

# Above v5e's 16 MiB scoped default; safely below v7x's 64 MiB physical VMEM.
VMEM_LIMIT_BYTES = 32 * 1024 * 1024


def _round_up(x, m):
    return (x + m - 1) // m * m


# ---------------------------------------------------------------------------
# Kernel 1: shared MLP + fused product-key similarity projection
#   h   = silu(x @ W_up + b_up)
#   hp  = h @ W_dn + b_dn                        (kept f32 for routing stability)
#   sim = hp @ W_sim          (W_sim = wq (x) keys, fused once in prepare_params)
# ---------------------------------------------------------------------------
def dense_kernel(x_ref, w_up_ref, b_up_ref, w_dn_ref, b_dn_ref, w_sim_ref,
                 hpriv_ref, sim_ref):
    x = x_ref[...]                                                   # (TM, Dh) bf16
    h = jax.nn.silu(
        jnp.dot(x, w_up_ref[...], preferred_element_type=jnp.float32)
        + b_up_ref[...])                                             # (TM, Ds)  f32
    hp = (jnp.dot(h.astype(jnp.bfloat16), w_dn_ref[...],
                  preferred_element_type=jnp.float32)
          + b_dn_ref[...])                                           # (TM, Dp_pad) f32
    hpriv_ref[...] = hp
    sim_ref[...] = jnp.dot(hp.astype(jnp.bfloat16), w_sim_ref[...],
                           preferred_element_type=jnp.float32)       # (TM, simw_pad)


def dense_forward(x2d, prep, *, tm):
    n_pad, d_h = x2d.shape
    w_up, b_up = prep["w_up"], prep["b_up"]
    w_dn, b_dn = prep["w_dn"], prep["b_dn"]
    w_sim = prep["w_sim"]
    d_p_pad = w_dn.shape[1]
    simw_pad = w_sim.shape[1]
    assert n_pad % tm == 0
    return pl.pallas_call(
        dense_kernel,
        out_shape=(jax.ShapeDtypeStruct((n_pad, d_p_pad), jnp.float32),
                   jax.ShapeDtypeStruct((n_pad, simw_pad), jnp.float32)),
        grid=(n_pad // tm,),
        in_specs=[
            pl.BlockSpec((tm, d_h), lambda i: (i, 0)),
            # Grid-invariant weights: full-array blocks resident in VMEM.
            pl.BlockSpec(w_up.shape, lambda i: (0, 0)),
            pl.BlockSpec(b_up.shape, lambda i: (0, 0)),
            pl.BlockSpec(w_dn.shape, lambda i: (0, 0)),
            pl.BlockSpec(b_dn.shape, lambda i: (0, 0)),
            pl.BlockSpec(w_sim.shape, lambda i: (0, 0)),
        ],
        out_specs=(pl.BlockSpec((tm, d_p_pad), lambda i: (i, 0)),
                   pl.BlockSpec((tm, simw_pad), lambda i: (i, 0))),
        compiler_params=pltpu.CompilerParams(
            dimension_semantics=("parallel",),
            vmem_limit_bytes=VMEM_LIMIT_BYTES),
    )(x2d, w_up, b_up, w_dn, b_dn, w_sim)


def dense_reference(x2d, prep):
    """Pure-JAX twin of dense_kernel with the SAME numerics policy."""
    h = jax.nn.silu(jnp.dot(x2d, prep["w_up"],
                            preferred_element_type=jnp.float32) + prep["b_up"])
    hp = jnp.dot(h.astype(jnp.bfloat16), prep["w_dn"],
                 preferred_element_type=jnp.float32) + prep["b_dn"]
    sim = jnp.dot(hp.astype(jnp.bfloat16), prep["w_sim"],
                  preferred_element_type=jnp.float32)
    return hp, sim


# ---------------------------------------------------------------------------
# Kernel 2: expert mixing (memory bound)
#   logits_k = <hp, up_k>;  w_k = silu(logits_k) * gate_k;  out = sum_k w_k * down_k
# Embeddings arrive in (HK, TM, D) layout so each expert slot is a cheap
# leading-axis static slice; no (TM, HK, D) f32 promotion temporaries.
# ---------------------------------------------------------------------------
def mix_kernel(hp_ref, up_ref, down_ref, gate_ref, out_ref):
    hp = hp_ref[...]                                         # (TM, Dp_pad) f32
    gates = gate_ref[...]                                    # (TM, HK)     f32
    hk = up_ref.shape[0]
    acc = jnp.zeros(out_ref.shape, jnp.float32)              # (TM, Dh_pad)
    for k in range(hk):                                      # static unroll over expert slots
        up_k = up_ref[k].astype(jnp.float32)                 # (TM, Dp_pad)
        logit = jnp.sum(hp * up_k, axis=-1, keepdims=True)   # (TM, 1)
        w_k = jax.nn.silu(logit) * gates[:, k:k + 1]         # (TM, 1)
        acc = acc + w_k * down_ref[k].astype(jnp.float32)    # (TM, Dh_pad)
    out_ref[...] = acc


def mix_forward(hp2d, up3, down3, gates2d, *, tm):
    n_pad, d_p_pad = hp2d.shape
    hk = up3.shape[0]
    d_h_pad = down3.shape[2]
    assert n_pad % tm == 0
    return pl.pallas_call(
        mix_kernel,
        out_shape=jax.ShapeDtypeStruct((n_pad, d_h_pad), jnp.float32),
        grid=(n_pad // tm,),
        in_specs=[
            pl.BlockSpec((tm, d_p_pad), lambda i: (i, 0)),
            pl.BlockSpec((hk, tm, d_p_pad), lambda i: (0, i, 0)),
            pl.BlockSpec((hk, tm, d_h_pad), lambda i: (0, i, 0)),
            pl.BlockSpec((tm, hk), lambda i: (i, 0)),
        ],
        out_specs=pl.BlockSpec((tm, d_h_pad), lambda i: (i, 0)),
        compiler_params=pltpu.CompilerParams(
            dimension_semantics=("parallel",),
            vmem_limit_bytes=VMEM_LIMIT_BYTES),
    )(hp2d, up3, down3, gates2d)


def mix_reference(hp2d, up3, down3, gates2d):
    """Pure-JAX twin of mix_kernel with the SAME numerics policy."""
    logits = jnp.einsum('knc,nc->nk', up3.astype(jnp.float32), hp2d)
    w = jax.nn.silu(logits) * gates2d
    return jnp.einsum('nk,knd->nd', w, down3.astype(jnp.float32))


# ---------------------------------------------------------------------------
# Parameter preparation (hoisted; run once per parameter update)
#   * fuse W_sim = wq (x) keys  (exact algebra, removes a matmul + zero blocks)
#   * cast MXU weights / embedding tables to bf16
#   * zero-pad feature dims to multiples of 128 -> lane-dense kernel stores
# ---------------------------------------------------------------------------
def prepare_params(params, cfg):
    H, K, Dp = cfg["num_heads"], cfg["num_keys"], cfg["d_priv"]
    d_half = Dp // 2
    dh = params["w_up"].shape[0]
    embed_dtype = cfg.get("embed_dtype", jnp.bfloat16)

    dp_pad = _round_up(Dp, 128)
    dh_pad = _round_up(dh, 128)
    simw = 2 * H * K
    simw_pad = _round_up(simw, 128)

    # W_sim[c, (p, h, k)] = sum_d wq[c, (p, h, d)] * keys[h, k, p, d]
    wq_r = params["wq"].reshape(Dp, 2, H, d_half)
    w_sim = jnp.einsum('cphd,hkpd->cphk', wq_r, params["keys"]).reshape(Dp, simw)
    w_sim = jnp.pad(w_sim, ((0, dp_pad - Dp), (0, simw_pad - simw)))

    w_dn = jnp.pad(params["w_dn"], ((0, 0), (0, dp_pad - Dp)))
    b_dn = jnp.pad(params["b_dn"], ((0, 0), (0, dp_pad - Dp)))
    up_embed = jnp.pad(params["up_embed"], ((0, 0), (0, dp_pad - Dp)))
    down_embed = jnp.pad(params["down_embed"], ((0, 0), (0, dh_pad - dh)))

    return dict(
        w_up=params["w_up"].astype(jnp.bfloat16),
        b_up=params["b_up"].astype(jnp.float32),
        w_dn=w_dn.astype(jnp.bfloat16),
        b_dn=b_dn.astype(jnp.float32),
        w_sim=w_sim.astype(jnp.bfloat16),
        up_embed=up_embed.astype(embed_dtype),
        down_embed=down_embed.astype(embed_dtype),
        dp_pad=dp_pad, dh_pad=dh_pad, simw=simw, simw_pad=simw_pad,
    )


# ---------------------------------------------------------------------------
# Full forward (Pallas kernels + plain-JAX top-k / gather glue)
# ---------------------------------------------------------------------------
def doge_cdmome_forward(x, prep, cfg, *, use_pallas=True):
    B, T, Dh = x.shape
    H, K, kph = cfg["num_heads"], cfg["num_keys"], cfg["kph"]
    HK = H * kph
    simw = prep["simw"]
    n = B * T

    # Row-tile sizing: large tiles for MXU / HBM-roofline efficiency, zero-pad
    # the token axis so partial tiles are never dropped.
    if n >= 256:
        n_pad = _round_up(n, 256)
        tm_dense, tm_mix = 256, 256
    else:
        n_pad = _round_up(n, 8)
        tm_dense = tm_mix = 8

    def pad_rows(a, axis=0):
        pad = [(0, 0)] * a.ndim
        pad[axis] = (0, n_pad - a.shape[axis])
        return jnp.pad(a, pad)

    x2d = pad_rows(x.reshape(n, Dh)).astype(jnp.bfloat16)

    if use_pallas:
        hp_p, sim_p = dense_forward(x2d, prep, tm=tm_dense)
    else:
        hp_p, sim_p = dense_reference(x2d, prep)

    # --- product-key routing (plain JAX glue; no clean Pallas top-k) ---
    sim = sim_p[:n, :simw].reshape(B, T, 2, H, K)
    sim = jnp.transpose(sim, (2, 0, 1, 3, 4))                  # (2, B, T, H, K)
    scores_x, indices_x = jax.lax.top_k(sim[0], kph)           # (B, T, H, kph)
    scores_y, indices_y = jax.lax.top_k(sim[1], kph)
    all_scores = (scores_x[..., :, None] + scores_y[..., None, :]
                  ).reshape(B, T, H, kph * kph)
    all_indices = (indices_x[..., :, None] * K + indices_y[..., None, :]
                   ).reshape(B, T, H, kph * kph)
    scores, pk = jax.lax.top_k(all_scores, kph)                # (B, T, H, kph)
    indices = jnp.take_along_axis(all_indices, pk, axis=-1)    # (B, T, H, kph)

    gates = jax.nn.softmax(scores, axis=-1).reshape(n, HK)     # (n, HK) f32
    idx_t = indices.reshape(n, HK).T                           # (HK, n)
    up3 = pad_rows(prep["up_embed"][idx_t], axis=1)            # (HK, n_pad, Dp_pad) bf16
    down3 = pad_rows(prep["down_embed"][idx_t], axis=1)        # (HK, n_pad, Dh_pad) bf16
    gates_p = pad_rows(gates)                                  # (n_pad, HK)

    if use_pallas:
        out_p = mix_forward(hp_p, up3, down3, gates_p, tm=tm_mix)
    else:
        out_p = mix_reference(hp_p, up3, down3, gates_p)
    return out_p[:n, :Dh].reshape(B, T, Dh)


# ---------------------------------------------------------------------------
# Pure-f32 module-faithful reference (mirrors the PyTorch forward exactly)
# ---------------------------------------------------------------------------
def ref_forward_f32(x, params, cfg):
    B, T, Dh = x.shape
    H, K, kph = cfg["num_heads"], cfg["num_keys"], cfg["kph"]
    Dp = cfg["d_priv"]
    d_half = Dp // 2

    h = jax.nn.silu(x @ params["w_up"] + params["b_up"])
    hp = h @ params["w_dn"] + params["b_dn"]                    # (B, T, Dp)
    q = (hp @ params["wq"]).reshape(B, T, 2, H, d_half)
    q = jnp.transpose(q, (2, 0, 1, 3, 4))                       # p b t h d
    sim = jnp.einsum('pbthd,hkpd->pbthk', q, params["keys"])
    scores_x, indices_x = jax.lax.top_k(sim[0], kph)
    scores_y, indices_y = jax.lax.top_k(sim[1], kph)
    all_scores = (scores_x[..., :, None] + scores_y[..., None, :]
                  ).reshape(B, T, H, kph * kph)
    all_indices = (indices_x[..., :, None] * K + indices_y[..., None, :]
                   ).reshape(B, T, H, kph * kph)
    scores, pk = jax.lax.top_k(all_scores, kph)
    indices = jnp.take_along_axis(all_indices, pk, axis=-1)
    up_e = params["up_embed"][indices]
    down_e = params["down_embed"][indices]
    logits = jnp.einsum('btd,bthkd->bthk', hp, up_e)
    w = jax.nn.silu(logits) * jax.nn.softmax(scores, axis=-1)
    return jnp.einsum('bthk,bthkd->btd', w, down_e)


if __name__ == "__main__":
    # Small config consistent with the module.
    B, T = 2, 8
    Dh = 32          # hidden_size
    Ds = 64          # shared_expert_intermediate_size
    Dp = 32          # private_expert_intermediate_size
    E = 64           # num_cdmmoe_experts
    K = 8            # num_keys = sqrt(E)
    H = 2            # num_cdmmoe_heads
    kph = 4          # num_cdmmoe_experts_per_head
    d_half = Dp // 2
    cfg = dict(num_heads=H, num_keys=K, kph=kph, d_priv=Dp,
               embed_dtype=jnp.bfloat16)

    key = jax.random.PRNGKey(0)
    ks = jax.random.split(key, 9)
    params = {
        "w_up": jax.random.normal(ks[0], (Dh, Ds), jnp.float32) * 0.1,
        "b_up": jax.random.normal(ks[1], (1, Ds), jnp.float32) * 0.1,
        "w_dn": jax.random.normal(ks[2], (Ds, Dp), jnp.float32) * 0.1,
        "b_dn": jax.random.normal(ks[3], (1, Dp), jnp.float32) * 0.1,
        "wq": jax.random.normal(ks[4], (Dp, 2 * H * d_half), jnp.float32) * 0.1,
        # NOTE: torch init is zeros; use random keys for a non-degenerate test.
        "keys": jax.random.normal(ks[5], (H, K, 2, d_half), jnp.float32) * 0.1,
        "up_embed": jax.random.normal(ks[6], (E, Dp), jnp.float32) * 0.1,
        "down_embed": jax.random.normal(ks[7], (E, Dh), jnp.float32) * 0.1,
    }
    x = jax.random.normal(ks[8], (B, T, Dh), jnp.float32)

    prep = prepare_params(params, cfg)          # hoisted: once per param update
    fwd = jax.jit(lambda xx: doge_cdmome_forward(xx, prep, cfg, use_pallas=True))
    out = jax.block_until_ready(fwd(x))
    assert out.shape == (B, T, Dh)
    assert not bool(jnp.any(jnp.isnan(out)))

    # Strict check: pure-JAX twin with the identical numerics policy
    # (bf16 MXU operands, fused W_sim, padded feature dims, bf16 embeddings).
    ref_matched = doge_cdmome_forward(x, prep, cfg, use_pallas=False)
    md = float(jnp.max(jnp.abs(out - ref_matched)))
    assert jnp.allclose(out, ref_matched, atol=2e-2, rtol=2e-2), (
        f"matched-ref max abs diff {md}")

    # Loose check: full-f32 module-faithful reference.  bf16 MXU/embedding
    # policy (and rare near-tie top-k flips) make this a gross-error check only.
    ref_f32 = ref_forward_f32(x, params, cfg)
    assert float(jnp.max(jnp.abs(out - ref_f32))) < 0.25

    print("KERNEL_OK")
</pallas_src>

<mosaic_0001>
module attributes {stable_mosaic.version = 11 : i64} {
  func.func @dense_kernel(%arg0: i32, %arg1: memref<8x32xbf16, #tpu.memory_space<vmem>>, %arg2: memref<32x64xbf16, #tpu.memory_space<vmem>>, %arg3: memref<1x64xf32, #tpu.memory_space<vmem>>, %arg4: memref<64x128xbf16, #tpu.memory_space<vmem>>, %arg5: memref<1x128xf32, #tpu.memory_space<vmem>>, %arg6: memref<128x128xbf16, #tpu.memory_space<vmem>>, %arg7: memref<8x128xf32, #tpu.memory_space<vmem>>, %arg8: memref<8x128xf32, #tpu.memory_space<vmem>>) attributes {dimension_semantics = [#tpu.dimension_semantics<parallel>], iteration_bounds = array<i64: 2>, scalar_prefetch = 0 : i64, scratch_operands = 0 : i64, tpu.core_type = #tpu.core_type<tc>, window_params = [{transform_indices = @transform_0, window_bounds = array<i64: 8, 32>}, {pipeline_mode = #tpu.pipeline_mode<synchronous>, transform_indices = @transform_1, window_bounds = array<i64: 32, 64>}, {pipeline_mode = #tpu.pipeline_mode<synchronous>, transform_indices = @transform_2, window_bounds = array<i64: 1, 64>}, {pipeline_mode = #tpu.pipeline_mode<synchronous>, transform_indices = @transform_3, window_bounds = array<i64: 64, 128>}, {pipeline_mode = #tpu.pipeline_mode<synchronous>, transform_indices = @transform_4, window_bounds = array<i64: 1, 128>}, {pipeline_mode = #tpu.pipeline_mode<synchronous>, transform_indices = @transform_5, window_bounds = array<i64: 128, 128>}, {transform_indices = @transform_6, window_bounds = array<i64: 8, 128>}, {transform_indices = @transform_7, window_bounds = array<i64: 8, 128>}]} {
    %c0 = arith.constant 0 : index
    %c0_0 = arith.constant 0 : index
    %0 = vector.load %arg1[%c0, %c0_0] : memref<8x32xbf16, #tpu.memory_space<vmem>>, vector<8x32xbf16>
    %c0_1 = arith.constant 0 : index
    %c0_2 = arith.constant 0 : index
    %1 = vector.load %arg2[%c0_1, %c0_2] : memref<32x64xbf16, #tpu.memory_space<vmem>>, vector<32x64xbf16>
    %cst = arith.constant dense<0.000000e+00> : vector<8x64xf32>
    %2 = tpu.matmul %0, %1, %cst {dimension_numbers = #tpu.dot_dimension_numbers<[1], [0], [0], [1], [0, 0, 1, 1], [], []>} : vector<8x32xbf16>, vector<32x64xbf16>, vector<8x64xf32> -> vector<8x64xf32>
    %c0_3 = arith.constant 0 : index
    %c0_4 = arith.constant 0 : index
    %3 = vector.load %arg3[%c0_3, %c0_4] : memref<1x64xf32, #tpu.memory_space<vmem>>, vector<1x64xf32>
    %4 = vector.broadcast %3 : vector<1x64xf32> to vector<8x64xf32>
    %5 = arith.addf %2, %4 : vector<8x64xf32>
    %6 = arith.negf %5 : vector<8x64xf32>
    %7 = math.exp %6 : vector<8x64xf32>
    %cst_5 = arith.constant 1.000000e+00 : f32
    %8 = vector.broadcast %cst_5 : f32 to vector<8x64xf32>
    %9 = arith.addf %8, %7 : vector<8x64xf32>
    %10 = arith.divf %8, %9 : vector<8x64xf32>
    %11 = arith.mulf %5, %10 : vector<8x64xf32>
    %12 = arith.truncf %11 : vector<8x64xf32> to vector<8x64xbf16>
    %c0_6 = arith.constant 0 : index
    %c0_7 = arith.constant 0 : index
    %13 = vector.load %arg4[%c0_6, %c0_7] : memref<64x128xbf16, #tpu.memory_space<vmem>>, vector<64x128xbf16>
    %cst_8 = arith.constant dense<0.000000e+00> : vector<8x128xf32>
    %14 = tpu.matmul %12, %13, %cst_8 {dimension_numbers = #tpu.dot_dimension_numbers<[1], [0], [0], [1], [0, 0, 1, 1], [], []>} : vector<8x64xbf16>, vector<64x128xbf16>, vector<8x128xf32> -> vector<8x128xf32>
    %c0_9 = arith.constant 0 : index
    %c0_10 = arith.constant 0 : index
    %15 = vector.load %arg5[%c0_9, %c0_10] : memref<1x128xf32, #tpu.memory_space<vmem>>, vector<1x128xf32>
    %16 = vector.broadcast %15 : vector<1x128xf32> to vector<8x128xf32>
    %17 = arith.addf %14, %16 : vector<8x128xf32>
    %c0_11 = arith.constant 0 : index
    %c0_12 = arith.constant 0 : index
    %18 = vector.load %arg7[%c0_11, %c0_12] : memref<8x128xf32, #tpu.memory_space<vmem>>, vector<8x128xf32>
    tpu.vector_store %arg7[%c0_11, %c0_12], %17 {strides = array<i32>} : memref<8x128xf32, #tpu.memory_space<vmem>>, vector<8x128xf32>,
    %19 = arith.truncf %17 : vector<8x128xf32> to vector<8x128xbf16>
    %c0_13 = arith.constant 0 : index
    %c0_14 = arith.constant 0 : index
    %20 = vector.load %arg6[%c0_13, %c0_14] : memref<128x128xbf16, #tpu.memory_space<vmem>>, vector<128x128xbf16>
    %cst_15 = arith.constant dense<0.000000e+00> : vector<8x128xf32>
    %21 = tpu.matmul %19, %20, %cst_15 {dimension_numbers = #tpu.dot_dimension_numbers<[1], [0], [0], [1], [0, 0, 1, 1], [], []>} : vector<8x128xbf16>, vector<128x128xbf16>, vector<8x128xf32> -> vector<8x128xf32>
    %c0_16 = arith.constant 0 : index
    %c0_17 = arith.constant 0 : index
    %22 = vector.load %arg8[%c0_16, %c0_17] : memref<8x128xf32, #tpu.memory_space<vmem>>, vector<8x128xf32>
    tpu.vector_store %arg8[%c0_16, %c0_17], %21 {strides = array<i32>} : memref<8x128xf32, #tpu.memory_space<vmem>>, vector<8x128xf32>,
    return
  }
  func.func @transform_0(%arg0: i32) -> (i32, i32) {
    %c0_i32 = arith.constant 0 : i32
    %c0_i32_0 = arith.constant 0 : i32
    return %arg0, %c0_i32 : i32, i32
  }
  func.func @transform_1(%arg0: i32) -> (i32, i32) {
    %c0_i32 = arith.constant 0 : i32
    %c0_i32_0 = arith.constant 0 : i32
    %c0_i32_1 = arith.constant 0 : i32
    return %c0_i32, %c0_i32_0 : i32, i32
  }
  func.func @transform_2(%arg0: i32) -> (i32, i32) {
    %c0_i32 = arith.constant 0 : i32
    %c0_i32_0 = arith.constant 0 : i32
    %c0_i32_1 = arith.constant 0 : i32
    return %c0_i32, %c0_i32_0 : i32, i32
  }
  func.func @transform_3(%arg0: i32) -> (i32, i32) {
    %c0_i32 = arith.constant 0 : i32
    %c0_i32_0 = arith.constant 0 : i32
    %c0_i32_1 = arith.constant 0 : i32
    return %c0_i32, %c0_i32_0 : i32, i32
  }
  func.func @transform_4(%arg0: i32) -> (i32, i32) {
    %c0_i32 = arith.constant 0 : i32
    %c0_i32_0 = arith.constant 0 : i32
    %c0_i32_1 = arith.constant 0 : i32
    return %c0_i32, %c0_i32_0 : i32, i32
  }
  func.func @transform_5(%arg0: i32) -> (i32, i32) {
    %c0_i32 = arith.constant 0 : i32
    %c0_i32_0 = arith.constant 0 : i32
    %c0_i32_1 = arith.constant 0 : i32
    return %c0_i32, %c0_i32_0 : i32, i32
  }
  func.func @transform_6(%arg0: i32) -> (i32, i32) {
    %c0_i32 = arith.constant 0 : i32
    %c0_i32_0 = arith.constant 0 : i32
    return %arg0, %c0_i32 : i32, i32
  }
  func.func @transform_7(%arg0: i32) -> (i32, i32) {
    %c0_i32 = arith.constant 0 : i32
    %c0_i32_0 = arith.constant 0 : i32
    return %arg0, %c0_i32 : i32, i32
  }
}

module attributes {stable_mosaic.version = 11 : i64} {
  func.func @mix_kernel(%arg0: i32, %arg1: memref<8x128xf32, #tpu.memory_space<vmem>>, %arg2: memref<8x8x128xbf16, #tpu.memory_space<vmem>>, %arg3: memref<8x8x128xbf16, #tpu.memory_space<vmem>>, %arg4: memref<8x8xf32, #tpu.memory_space<vmem>>, %arg5: memref<8x128xf32, #tpu.memory_space<vmem>>) attributes {dimension_semantics = [#tpu.dimension_semantics<parallel>], iteration_bounds = array<i64: 2>, scalar_prefetch = 0 : i64, scratch_operands = 0 : i64, tpu.core_type = #tpu.core_type<tc>, window_params = [{transform_indices = @transform_0, window_bounds = array<i64: 8, 128>}, {transform_indices = @transform_1, window_bounds = array<i64: 8, 8, 128>}, {transform_indices = @transform_2, window_bounds = array<i64: 8, 8, 128>}, {transform_indices = @transform_3, window_bounds = array<i64: 8, 8>}, {transform_indices = @transform_4, window_bounds = array<i64: 8, 128>}]} {
    %c0 = arith.constant 0 : index
    %c0_0 = arith.constant 0 : index
    %0 = vector.load %arg1[%c0, %c0_0] : memref<8x128xf32, #tpu.memory_space<vmem>>, vector<8x128xf32>
    %c0_1 = arith.constant 0 : index
    %c0_2 = arith.constant 0 : index
    %1 = vector.load %arg4[%c0_1, %c0_2] : memref<8x8xf32, #tpu.memory_space<vmem>>, vector<8x8xf32>
    %cst = arith.constant 0.000000e+00 : f32
    %2 = vector.broadcast %cst : f32 to vector<8x128xf32>
    %c0_3 = arith.constant 0 : index
    %c0_4 = arith.constant 0 : index
    %c0_5 = arith.constant 0 : index
    %3 = vector.load %arg2[%c0_3, %c0_4, %c0_5] : memref<8x8x128xbf16, #tpu.memory_space<vmem>>, vector<1x8x128xbf16>
    %4 = vector.shape_cast %3 : vector<1x8x128xbf16> to vector<8x128xbf16>
    %5 = arith.extf %4 : vector<8x128xbf16> to vector<8x128xf32>
    %6 = arith.mulf %0, %5 : vector<8x128xf32>
    %cst_6 = arith.constant dense<0.000000e+00> : vector<8xf32>
    %7 = vector.multi_reduction <add>, %6, %cst_6 [1] : vector<8x128xf32> to vector<8xf32>
    %8 = vector.shape_cast %7 : vector<8xf32> to vector<8x1xf32>
    %9 = arith.negf %8 : vector<8x1xf32>
    %10 = math.exp %9 : vector<8x1xf32>
    %cst_7 = arith.constant 1.000000e+00 : f32
    %11 = vector.broadcast %cst_7 : f32 to vector<8x1xf32>
    %12 = arith.addf %11, %10 : vector<8x1xf32>
    %13 = arith.divf %11, %12 : vector<8x1xf32>
    %14 = arith.mulf %8, %13 : vector<8x1xf32>
    %15 = vector.extract_strided_slice %1 {offsets = [0, 0], sizes = [8, 1], strides = [1, 1]} : vector<8x8xf32> to vector<8x1xf32>
    %16 = arith.mulf %14, %15 : vector<8x1xf32>
    %c0_8 = arith.constant 0 : index
    %c0_9 = arith.constant 0 : index
    %c0_10 = arith.constant 0 : index
    %17 = vector.load %arg3[%c0_8, %c0_9, %c0_10] : memref<8x8x128xbf16, #tpu.memory_space<vmem>>, vector<1x8x128xbf16>
    %18 = vector.shape_cast %17 : vector<1x8x128xbf16> to vector<8x128xbf16>
    %19 = arith.extf %18 : vector<8x128xbf16> to vector<8x128xf32>
    %20 = vector.broadcast %16 : vector<8x1xf32> to vector<8x128xf32>
    %21 = arith.mulf %20, %19 : vector<8x128xf32>
    %22 = arith.addf %2, %21 : vector<8x128xf32>
    %c1 = arith.constant 1 : index
    %c0_11 = arith.constant 0 : index
    %c0_12 = arith.constant 0 : index
    %23 = vector.load %arg2[%c1, %c0_11, %c0_12] : memref<8x8x128xbf16, #tpu.memory_space<vmem>>, vector<1x8x128xbf16>
    %24 = vector.shape_cast %23 : vector<1x8x128xbf16> to vector<8x128xbf16>
    %25 = arith.extf %24 : vector<8x128xbf16> to vector<8x128xf32>
    %26 = arith.mulf %0, %25 : vector<8x128xf32>
    %cst_13 = arith.constant dense<0.000000e+00> : vector<8xf32>
    %27 = vector.multi_reduction <add>, %26, %cst_13 [1] : vector<8x128xf32> to vector<8xf32>
    %28 = vector.shape_cast %27 : vector<8xf32> to vector<8x1xf32>
    %29 = arith.negf %28 : vector<8x1xf32>
    %30 = math.exp %29 : vector<8x1xf32>
    %cst_14 = arith.constant 1.000000e+00 : f32
    %31 = vector.broadcast %cst_14 : f32 to vector<8x1xf32>
    %32 = arith.addf %31, %30 : vector<8x1xf32>
    %33 = arith.divf %31, %32 : vector<8x1xf32>
    %34 = arith.mulf %28, %33 : vector<8x1xf32>
    %35 = vector.extract_strided_slice %1 {offsets = [0, 1], sizes = [8, 1], strides = [1, 1]} : vector<8x8xf32> to vector<8x1xf32>
    %36 = arith.mulf %34, %35 : vector<8x1xf32>
    %c1_15 = arith.constant 1 : index
    %c0_16 = arith.constant 0 : index
    %c0_17 = arith.constant 0 : index
    %37 = vector.load %arg3[%c1_15, %c0_16, %c0_17] : memref<8x8x128xbf16, #tpu.memory_space<vmem>>, vector<1x8x128xbf16>
    %38 = vector.shape_cast %37 : vector<1x8x128xbf16> to vector<8x128xbf16>
    %39 = arith.extf %38 : vector<8x128xbf16> to vector<8x128xf32>
    %40 = vector.broadcast %36 : vector<8x1xf32> to vector<8x128xf32>
    %41 = arith.mulf %40, %39 : vector<8x128xf32>
    %42 = arith.addf %22, %41 : vector<8x128xf32>
    %c2 = arith.constant 2 : index
    %c0_18 = arith.constant 0 : index
    %c0_19 = arith.constant 0 : index
    %43 = vector.load %arg2[%c2, %c0_18, %c0_19] : memref<8x8x128xbf16, #tpu.memory_space<vmem>>, vector<1x8x128xbf16>
    %44 = vector.shape_cast %43 : vector<1x8x128xbf16> to vector<8x128xbf16>
    %45 = arith.extf %44 : vector<8x128xbf16> to vector<8x128xf32>
    %46 = arith.mulf %0, %45 : vector<8x128xf32>
    %cst_20 = arith.constant dense<0.000000e+00> : vector<8xf32>
    %47 = vector.multi_reduction <add>, %46, %cst_20 [1] : vector<8x128xf32> to vector<8xf32>
    %48 = vector.shape_cast %47 : vector<8xf32> to vector<8x1xf32>
    %49 = arith.negf %48 : vector<8x1xf32>
    %50 = math.exp %49 : vector<8x1xf32>
    %cst_21 = arith.constant 1.000000e+00 : f32
    %51 = vector.broadcast %cst_21 : f32 to vector<8x1xf32>
    %52 = arith.addf %51, %50 : vector<8x1xf32>
    %53 = arith.divf %51, %52 : vector<8x1xf32>
    %54 = arith.mulf %48, %53 : vector<8x1xf32>
    %55 = vector.extract_strided_slice %1 {offsets = [0, 2], sizes = [8, 1], strides = [1, 1]} : vector<8x8xf32> to vector<8x1xf32>
    %56 = arith.mulf %54, %55 : vector<8x1xf32>
    %c2_22 = arith.constant 2 : index
    %c0_23 = arith.constant 0 : index
    %c0_24 = arith.constant 0 : index
    %57 = vector.load %arg3[%c2_22, %c0_23, %c0_24] : memref<8x8x128xbf16, #tpu.memory_space<vmem>>, vector<1x8x128xbf16>
    %58 = vector.shape_cast %57 : vector<1x8x128xbf16> to vector<8x128xbf16>
    %59 = arith.extf %58 : vector<8x128xbf16> to vector<8x128xf32>
    %60 = vector.broadcast %56 : vector<8x1xf32> to vector<8x128xf32>
    %61 = arith.mulf %60, %59 : vector<8x128xf32>
    %62 = arith.addf %42, %61 : vector<8x128xf32>
    %c3 = arith.constant 3 : index
    %c0_25 = arith.constant 0 : index
    %c0_26 = arith.constant 0 : index
    %63 = vector.load %arg2[%c3, %c0_25, %c0_26] : memref<8x8x128xbf16, #tpu.memory_space<vmem>>, vector<1x8x128xbf16>
    %64 = vector.shape_cast %63 : vector<1x8x128xbf16> to vector<8x128xbf16>
    %65 = arith.extf %64 : vector<8x128xbf16> to vector<8x128xf32>
    %66 = arith.mulf %0, %65 : vector<8x128xf32>
    %cst_27 = arith.constant dense<0.000000e+00> : vector<8xf32>
    %67 = vector.multi_reduction <add>, %66, %cst_27 [1] : vector<8x128xf32> to vector<8xf32>
    %68 = vector.shape_cast %67 : vector<8xf32> to vector<8x1xf32>
    %69 = arith.negf %68 : vector<8x1xf32>
    %70 = math.exp %69 : vector<8x1xf32>
    %cst_28 = arith.constant 1.000000e+00 : f32
    %71 = vector.broadcast %cst_28 : f32 to vector<8x1xf32>
    %72 = arith.addf %71, %70 : vector<8x1xf32>
    %73 = arith.divf %71, %72 : vector<8x1xf32>
    %74 = arith.mulf %68, %73 : vector<8x1xf32>
    %75 = vector.extract_strided_slice %1 {offsets = [0, 3], sizes = [8, 1], strides = [1, 1]} : vector<8x8xf32> to vector<8x1xf32>
    %76 = arith.mulf %74, %75 : vector<8x1xf32>
    %c3_29 = arith.constant 3 : index
    %c0_30 = arith.constant 0 : index
    %c0_31 = arith.constant 0 : index
    %77 = vector.load %arg3[%c3_29, %c0_30, %c0_31] : memref<8x8x128xbf16, #tpu.memory_space<vmem>>, vector<1x8x128xbf16>
    %78 = vector.shape_cast %77 : vector<1x8x128xbf16> to vector<8x128xbf16>
    %79 = arith.extf %78 : vector<8x128xbf16> to vector<8x128xf32>
    %80 = vector.broadcast %76 : vector<8x1xf32> to vector<8x128xf32>
    %81 = arith.mulf %80, %79 : vector<8x128xf32>
    %82 = arith.addf %62, %81 : vector<8x128xf32>
    %c4 = arith.constant 4 : index
    %c0_32 = arith.constant 0 : index
    %c0_33 = arith.constant 0 : index
    %83 = vector.load %arg2[%c4, %c0_32, %c0_33] : memref<8x8x128xbf16, #tpu.memory_space<vmem>>, vector<1x8x128xbf16>
    %84 = vector.shape_cast %83 : vector<1x8x128xbf16> to vector<8x128xbf16>
    %85 = arith.extf %84 : vector<8x128xbf16> to vector<8x128xf32>
    %86 = arith.mulf %0, %85 : vector<8x128xf32>
    %cst_34 = arith.constant dense<0.000000e+00> : vector<8xf32>
    %87 = vector.multi_reduction <add>, %86, %cst_34 [1] : vector<8x128xf32> to vector<8xf32>
    %88 = vector.shape_cast %87 : vector<8xf32> to vector<8x1xf32>
    %89 = arith.negf %88 : vector<8x1xf32>
    %90 = math.exp %89 : vector<8x1xf32>
    %cst_35 = arith.constant 1.000000e+00 : f32
    %91 = vector.broadcast %cst_35 : f32 to vector<8x1xf32>
    %92 = arith.addf %91, %90 : vector<8x1xf32>
    %93 = arith.divf %91, %92 : vector<8x1xf32>
    %94 = arith.mulf %88, %93 : vector<8x1xf32>
    %95 = vector.extract_strided_slice %1 {offsets = [0, 4], sizes = [8, 1], strides = [1, 1]} : vector<8x8xf32> to vector<8x1xf32>
    %96 = arith.mulf %94, %95 : vector<8x1xf32>
    %c4_36 = arith.constant 4 : index
    %c0_37 = arith.constant 0 : index
    %c0_38 = arith.constant 0 : index
    %97 = vector.load %arg3[%c4_36, %c0_37, %c0_38] : memref<8x8x128xbf16, #tpu.memory_space<vmem>>, vector<1x8x128xbf16>
    %98 = vector.shape_cast %97 : vector<1x8x128xbf16> to vector<8x128xbf16>
    %99 = arith.extf %98 : vector<8x128xbf16> to vector<8x128xf32>
    %100 = vector.broadcast %96 : vector<8x1xf32> to vector<8x128xf32>
    %101 = arith.mulf %100, %99 : vector<8x128xf32>
    %102 = arith.addf %82, %101 : vector<8x128xf32>
    %c5 = arith.constant 5 : index
    %c0_39 = arith.constant 0 : index
    %c0_40 = arith.constant 0 : index
    %103 = vector.load %arg2[%c5, %c0_39, %c0_40] : memref<8x8x128xbf16, #tpu.memory_space<vmem>>, vector<1x8x128xbf16>
    %104 = vector.shape_cast %103 : vector<1x8x128xbf16> to vector<8x128xbf16>
    %105 = arith.extf %104 : vector<8x128xbf16> to vector<8x128xf32>
    %106 = arith.mulf %0, %105 : vector<8x128xf32>
    %cst_41 = arith.constant dense<0.000000e+00> : vector<8xf32>
    %107 = vector.multi_reduction <add>, %106, %cst_41 [1] : vector<8x128xf32> to vector<8xf32>
    %108 = vector.shape_cast %107 : vector<8xf32> to vector<8x1xf32>
    %109 = arith.negf %108 : vector<8x1xf32>
    %110 = math.exp %109 : vector<8x1xf32>
    %cst_42 = arith.constant 1.000000e+00 : f32
    %111 = vector.broadcast %cst_42 : f32 to vector<8x1xf32>
    %112 = arith.addf %111, %110 : vector<8x1xf32>
    %113 = arith.divf %111, %112 : vector<8x1xf32>
    %114 = arith.mulf %108, %113 : vector<8x1xf32>
    %115 = vector.extract_strided_slice %1 {offsets = [0, 5], sizes = [8, 1], strides = [1, 1]} : vector<8x8xf32> to vector<8x1xf32>
    %116 = arith.mulf %114, %115 : vector<8x1xf32>
    %c5_43 = arith.constant 5 : index
    %c0_44 = arith.constant 0 : index
    %c0_45 = arith.constant 0 : index
    %117 = vector.load %arg3[%c5_43, %c0_44, %c0_45] : memref<8x8x128xbf16, #tpu.memory_space<vmem>>, vector<1x8x128xbf16>
    %118 = vector.shape_cast %117 : vector<1x8x128xbf16> to vector<8x128xbf16>
    %119 = arith.extf %118 : vector<8x128xbf16> to vector<8x128xf32>
    %120 = vector.broadcast %116 : vector<8x1xf32> to vector<8x128xf32>
    %121 = arith.mulf %120, %119 : vector<8x128xf32>
    %122 = arith.addf %102, %121 : vector<8x128xf32>
    %c6 = arith.constant 6 : index
    %c0_46 = arith.constant 0 : index
    %c0_47 = arith.constant 0 : index
    %123 = vector.load %arg2[%c6, %c0_46, %c0_47] : memref<8x8x128xbf16, #tpu.memory_space<vmem>>, vector<1x8x128xbf16>
    %124 = vector.shape_cast %123 : vector<1x8x128xbf16> to vector<8x128xbf16>
    %125 = arith.extf %124 : vector<8x128xbf16> to vector<8x128xf32>
    %126 = arith.mulf %0, %125 : vector<8x128xf32>
    %cst_48 = arith.constant dense<0.000000e+00> : vector<8xf32>
    %127 = vector.multi_reduction <add>, %126, %cst_48 [1] : vector<8x128xf32> to vector<8xf32>
    %128 = vector.shape_cast %127 : vector<8xf32> to vector<8x1xf32>
    %129 = arith.negf %128 : vector<8x1xf32>
    %130 = math.exp %129 : vector<8x1xf32>
    %cst_49 = arith.constant 1.000000e+00 : f32
    %131 = vector.broadcast %cst_49 : f32 to vector<8x1xf32>
    %132 = arith.addf %131, %130 : vector<8x1xf32>
    %133 = arith.divf %131, %132 : vector<8x1xf32>
    %134 = arith.mulf %128, %133 : vector<8x1xf32>
    %135 = vector.extract_strided_slice %1 {offsets = [0, 6], sizes = [8, 1], strides = [1, 1]} : vector<8x8xf32> to vector<8x1xf32>
    %136 = arith.mulf %134, %135 : vector<8x1xf32>
    %c6_50 = arith.constant 6 : index
    %c0_51 = arith.constant 0 : index
    %c0_52 = arith.constant 0 : index
    %137 = vector.load %arg3[%c6_50, %c0_51, %c0_52] : memref<8x8x128xbf16, #tpu.memory_space<vmem>>, vector<1x8x128xbf16>
    %138 = vector.shape_cast %137 : vector<1x8x128xbf16> to vector<8x128xbf16>
    %139 = arith.extf %138 : vector<8x128xbf16> to vector<8x128xf32>
    %140 = vector.broadcast %136 : vector<8x1xf32> to vector<8x128xf32>
    %141 = arith.mulf %140, %139 : vector<8x128xf32>
    %142 = arith.addf %122, %141 : vector<8x128xf32>
    %c7 = arith.constant 7 : index
    %c0_53 = arith.constant 0 : index
    %c0_54 = arith.constant 0 : index
    %143 = vector.load %arg2[%c7, %c0_53, %c0_54] : memref<8x8x128xbf16, #tpu.memory_space<vmem>>, vector<1x8x128xbf16>
    %144 = vector.shape_cast %143 : vector<1x8x128xbf16> to vector<8x128xbf16>
    %145 = arith.extf %144 : vector<8x128xbf16> to vector<8x128xf32>
    %146 = arith.mulf %0, %145 : vector<8x128xf32>
    %cst_55 = arith.constant dense<0.000000e+00> : vector<8xf32>
    %147 = vector.multi_reduction <add>, %146, %cst_55 [1] : vector<8x128xf32> to vector<8xf32>
    %148 = vector.shape_cast %147 : vector<8xf32> to vector<8x1xf32>
    %149 = arith.negf %148 : vector<8x1xf32>
    %150 = math.exp %149 : vector<8x1xf32>
    %cst_56 = arith.constant 1.000000e+00 : f32
    %151 = vector.broadcast %cst_56 : f32 to vector<8x1xf32>
    %152 = arith.addf %151, %150 : vector<8x1xf32>
    %153 = arith.divf %151, %152 : vector<8x1xf32>
    %154 = arith.mulf %148, %153 : vector<8x1xf32>
    %155 = vector.extract_strided_slice %1 {offsets = [0, 7], sizes = [8, 1], strides = [1, 1]} : vector<8x8xf32> to vector<8x1xf32>
    %156 = arith.mulf %154, %155 : vector<8x1xf32>
    %c7_57 = arith.constant 7 : index
    %c0_58 = arith.constant 0 : index
    %c0_59 = arith.constant 0 : index
    %157 = vector.load %arg3[%c7_57, %c0_58, %c0_59] : memref<8x8x128xbf16, #tpu.memory_space<vmem>>, vector<1x8x128xbf16>
    %158 = vector.shape_cast %157 : vector<1x8x128xbf16> to vector<8x128xbf16>
    %159 = arith.extf %158 : vector<8x128xbf16> to vector<8x128xf32>
    %160 = vector.broadcast %156 : vector<8x1xf32> to vector<8x128xf32>
    %161 = arith.mulf %160, %159 : vector<8x128xf32>
    %162 = arith.addf %142, %161 : vector<8x128xf32>
    %c0_60 = arith.constant 0 : index
    %c0_61 = arith.constant 0 : index
    %163 = vector.load %arg5[%c0_60, %c0_61] : memref<8x128xf32, #tpu.memory_space<vmem>>, vector<8x128xf32>
    tpu.vector_store %arg5[%c0_60, %c0_61], %162 {strides = array<i32>} : memref<8x128xf32, #tpu.memory_space<vmem>>, vector<8x128xf32>,
    return
  }
  func.func @transform_0(%arg0: i32) -> (i32, i32) {
    %c0_i32 = arith.constant 0 : i32
    %c0_i32_0 = arith.constant 0 : i32
    return %arg0, %c0_i32 : i32, i32
  }
  func.func @transform_1(%arg0: i32) -> (i32, i32, i32) {
    %c0_i32 = arith.constant 0 : i32
    %c0_i32_0 = arith.constant 0 : i32
    %c0_i32_1 = arith.constant 0 : i32
    return %c0_i32, %arg0, %c0_i32_0 : i32, i32, i32
  }
  func.func @transform_2(%arg0: i32) -> (i32, i32, i32) {
    %c0_i32 = arith.constant 0 : i32
    %c0_i32_0 = arith.constant 0 : i32
    %c0_i32_1 = arith.constant 0 : i32
    return %c0_i32, %arg0, %c0_i32_0 : i32, i32, i32
  }
  func.func @transform_3(%arg0: i32) -> (i32, i32) {
    %c0_i32 = arith.constant 0 : i32
    %c0_i32_0 = arith.constant 0 : i32
    return %arg0, %c0_i32 : i32, i32
  }
  func.func @transform_4(%arg0: i32) -> (i32, i32) {
    %c0_i32 = arith.constant 0 : i32
    %c0_i32_0 = arith.constant 0 : i32
    return %arg0, %c0_i32 : i32, i32
  }
}

</mosaic_0001>

<bundles_post_ra>
// kernel: _lambda_.2
= control target key start
LH: loop header
LB: loop body
LE: loop exit
PB: predicated region body
PF: predicated region fallthrough
CT: control target
= control target key end

     0   :  { %13 = vsyncpa [#allocation3], 0  ;;  %s877_s24 = smov 0   ;;  %s967_s0 = inlined_call_operand.vmem [shape: bf16[16,32], index: 0, kind: input, shape index: {}]   ;;  %s968_s1 = inlined_call_operand.vmem [shape: bf16[32,64], index: 1, kind: input, shape index: {}]   ;;  %s969_s2 = inlined_call_operand.vmem [shape: f32[1,64], index: 2, kind: input, shape index: {}]   ;;  %s970_s3 = inlined_call_operand.vmem [shape: bf16[64,128], index: 3, kind: input, shape index: {}]   ;;  %s971_s4 = inlined_call_operand.vmem [shape: f32[1,128], index: 4, kind: input, shape index: {}]   ;;  %s972_s5 = inlined_call_operand.hbm [shape: bf16[128,128], index: 5, kind: input, shape index: {}]   ;;  %s973_s6 = inlined_call_operand.vmem [shape: f32[16,128], index: 6, kind: output, shape index: {0}]   ;;  %s974_s7 = inlined_call_operand.vmem [shape: f32[16,128], index: 7, kind: output, shape index: {1}]  }
   0x1 LB: > { %s883_s25 = sadd.s32 4294967295, %s830_s24   ;;  %p665_p0 = scmp.ge.s32.totalorder %s830_s24, 1  ;;  %s830_s24 = sphi %s877_s24, %s19_s24  }
   0x2   : > { %p207_p1 = scmp.lt.s32.totalorder %s830_s24, 3  ;;  %s832_s26 = smov [#allocation2]  }
   0x3   : > { %s231_s27 = sshll.u32 %s832_s26, 4  ;;  %p975_p3 = scmp.eq.s32.totalorder %s883_s25, 0  ;;  %s232_s27 = int_to_ptr.vmem [resolvable:$true] %s231_s27 }
   0x4   : > { %p887_p2 = pnand %p665_p0, %p207_p1  ;;  %s792_s9 = scalar_lea.hbm %s972_s5, 1024 }
   0x5   : > { %p793_p6 = scmp.ne.s32.totalorder %s972_s5, %s792_s9  ;;  %p799_p10 = scmp.lt.u32.totalorder %s792_s9, %s972_s5 }
   0x6   : > { %s977_s28 = scalar_select %p887_p2, 1, 0 }
   0x7   : > { %p755_p4 = pneg %p887_p2 }
   0x9   : > { %p896_p5 = pnand %p975_p3, %p755_p4 }
   0xb   : > { %p794_p7 = pneg %p896_p5 }
   0xd   : > { %p795_p8 = pnand %p794_p7, %p793_p6 }
   0xf   : > { %p796_p9 = pneg %p795_p8 }
  0x11   : > { %p801_p11 = pnand %p799_p10, %p796_p9 }
  0x13   : > { %804 = shalt.err (!%p801_p11)
}
  0x14   : > { %s805_s14 = scalar_lea.vmem %s232_s27, 1024  ;;  %p813_p1 = scmp.lt.s32.totalorder %s232_s27, %s232_s27 }
  0x15   : > { %p806_p12 = scmp.ne.s32.totalorder %s232_s27, %s805_s14  ;;  %p814_p4 = scmp.lt.s32.totalorder %s805_s14, %s805_s14 }
  0x17   : > { %p808_p13 = pnand %p806_p12, %p794_p7  ;;  %p815_p3 = por %p814_p4, %p813_p1 }
  0x19   : > { %p809_p0 = pneg %p808_p13 }
  0x1b   : > { %p816_p2 = pnand %p815_p3, %p809_p0 }
  0x1d   : > { %819 = shalt.err (!%p816_p2)
}
  0x1e   : > { %s833_s15 = smov 64   ;;  %s834_s16 = smov 4  }
  0x1f   : > { %758 = dma.hbm_to_vmem [thread:$0]  (!%p896_p5), %s972_s5, 1024, %s232_s27, [#allocation3], %s833_s15, %s833_s15, %s834_s16  }
  0x20   : > { %p979_p6 = scmp.ne.s32.totalorder %s977_s28, 0 }
  0x21   : > { %p980_p8 = scmp.eq.s32.totalorder (!%p979_p6), %s883_s25, 0 }
  0x22   : > { %254 = sbr.rel (%p979_p6) target bundleno = 727 (0x2d7), region = 44 }
  0x29   : > { %825 = dma.done.wait (%p980_p8), [#allocation3], 1024   ;;  %p981_p7 = pmov %p980_p8 }
  0x2a   : > { %p288_p2 = scmp.lt.s32.totalorder %s883_s25, 1  ;;  %v835_v0 = vmov 0.0   ;;  %vm836_vm0 = vmmov 0   ;;  %v774_v1 = vld [vmem:[%s968_s1] sm:$0xff]   ;;  %v775_v2 = vld [vmem:[%s968_s1 + $0x8] sm:$0xff]   ;;  %vm325_vm1 = vcmask 261120  }
  0x2b   : > { %827 = vsyncadd (%p981_p7), [#allocation3], 4294966272  ;;  %711 = vmatprep.subr.bf16.mxu1 %v835_v0  ;;  %715 = vmatprep.mubr.msk.bf16.mxu1 %vm836_vm0, %v835_v0  ;;  %v776_v4 = vld [vmem:[%s970_s3] sm:$0xff]   ;;  %v777_v5 = vld [vmem:[%s970_s3 + $0x8] sm:$0xff]   ;;  %vm416_vm2 = vcmask 523264  }
  0x2c   : > { %s983_s25 = smov (!%p288_p2, %s883_s25), 1  ;;  %731 = vmatprep.subr.bf16.mxu0 %v835_v0  ;;  %747 = vmatprep.mubr.msk.bf16.mxu0 %vm836_vm0, %v835_v0  ;;  %v778_v6 = vld [vmem:[%s970_s3 + $0x10] sm:$0xff]   ;;  %v779_v7 = vld [vmem:[%s970_s3 + $0x18] sm:$0xff]   ;;  %v780_v8 = vld [vmem:[#allocation2] sm:$0xff]  }
  0x2d   : > { %s670_s19 = sshll.u32 %s983_s25, 2  ;;  %712 = vmatpush3.bf16.msra.mxu1 %v774_v1  ;;  %732 = vmatpush3.bf16.msra.mxu0 %v780_v8  ;;  %v781_v9 = vld [vmem:[#allocation2 + $0x8] sm:$0xff]   ;;  %v782_v10 = vld [vmem:[#allocation2 + $0x10] sm:$0xff]   ;;  %v783_v11 = vld [vmem:[#allocation2 + $0x18] sm:$0xff]   ;;  %s671_s16 = sshll.u32 %s983_s25, 3 }
  0x2e   : > { %s291_s26 = scalar_lea.vmem %s967_s0, %s670_s19  ;;  %713 = vmatprep.subr.bf16.mxu1 %v835_v0  ;;  %733 = vmatprep.subr.bf16.mxu0 %v835_v0  ;;  %v784_v12 = vld [vmem:[#allocation2 + $0x20] sm:$0xff]   ;;  %v785_v13 = vld [vmem:[#allocation2 + $0x28] sm:$0xff]   ;;  %v786_v14 = vld [vmem:[#allocation2 + $0x30] sm:$0xff]   ;;  %s295_s21 = scalar_lea.vmem %s973_s6, %s671_s16 }
  0x2f   : > { %v301_v3 = vld [vmem:[%s291_s26] sm:$0xf]  ;;  %v787_v27 = vld [vmem:[#allocation2 + $0x38] sm:$0xff]   ;;  %s299_s25 = scalar_lea.vmem %s974_s7, %s671_s16 }
  0x30   : > { %v673_v15 = vld [vmem:[%s969_s2] ss:$0 sm:$0xff] }
  0x31   : > { %714 = vmatpush3.bf16.msra.mxu1 %v775_v2  ;;  %734 = vmatpush3.bf16.msra.mxu0 %v781_v9  ;;  %v678_v28 = vld [vmem:[%s971_s4] ss:$0 sm:$0xff] }
  0x32   : > { %719 = vmatprep.subr.bf16.mxu1 %v835_v0  ;;  %735 = vmatprep.subr.bf16.mxu0 %v835_v0 }
  0x34   : > { %716 = vmatmul.mubr.msk.bf16.vlgmr.msra.gmra.mrb[0].mxu1 %vm325_vm1, %v301_v3 }
  0x35   : > { %727 = vmatprep.mubr.msk.bf16.mxu1 %vm836_vm0, %v835_v0  ;;  %720 = vmatpush3.bf16.msra.mxu1 %v776_v4 }
  0x36   : > { %721 = vmatprep.subr.bf16.mxu1 %v835_v0  ;;  %736 = vmatpush3.bf16.msra.mxu0 %v782_v10 }
  0x37   : > { %737 = vmatprep.subr.bf16.mxu0 %v835_v0 }
  0x39   : > { %722 = vmatpush3.bf16.msra.mxu1 %v777_v5 }
  0x3a   : > { %723 = vmatprep.subr.bf16.mxu1 %v835_v0  ;;  %738 = vmatpush3.bf16.msra.mxu0 %v783_v11 }
  0x3b   : > { %739 = vmatprep.subr.bf16.mxu0 %v835_v0 }
  0x3d   : > { %724 = vmatpush3.bf16.msra.mxu1 %v778_v6 }
  0x3e   : > { %725 = vmatprep.subr.bf16.mxu1 %v835_v0  ;;  %740 = vmatpush3.bf16.msra.mxu0 %v784_v12 }
  0x3f   : > { %741 = vmatprep.subr.bf16.mxu0 %v835_v0 }
  0x41   : > { %726 = vmatpush3.bf16.msra.mxu1 %v779_v7 }
  0x42   : > { %742 = vmatpush3.bf16.msra.mxu0 %v785_v13 }
  0x43   : > { %743 = vmatprep.subr.bf16.mxu0 %v835_v0 }
  0x46   : > { %744 = vmatpush3.bf16.msra.mxu0 %v786_v14 }
  0x47   : > { %745 = vmatprep.subr.bf16.mxu0 %v835_v0 }
  0x4a   : > { %746 = vmatpush3.bf16.msra.mxu0 %v787_v27 }
 0x107   : > { %v363_v16 = vpop.f32.mrb[0].mxu1 }
 0x108   : > { %v364_v17 = vadd.f32 %v673_v15, %v363_v16  ;;  %v717_v18 = vpop.f32.mrb[1].mxu1 }
 0x109   : > { %v366_v19 = vpop.f32.mrb[2].mxu1 }
 0x10a   : > { %v677_v20 = vmul.f32 -1.442695, %v364_v17  ;;  %v718_v21 = vpop.f32.mrb[3].mxu1 }
 0x10c   : > { %788 = vpow2.f32 %v677_v20 }
 0x116   : > { %v789_v22 = vpop.eup %788 }
 0x117   : > { %v372_v23 = vadd.f32 1.0, %v789_v22 }
 0x119   : > { %790 = vrcp.f32 %v372_v23 }
 0x123   : > { %v791_v24 = vpop.eup %790 }
 0x124   : > { %v375_v25 = vmul.f32 %v791_v24, %v364_v17 }
 0x126   : > { %v376_v26 = vpack.c.bf16 %v375_v25, %v375_v25 }
 0x128   : > { %728 = vmatmul.mubr.msk.bf16.vlgmr.msra.gmra.mrb[4].mxu1 %vm416_vm2, %v376_v26 }
 0x1fb   : > { %v454_v29 = vpop.f32.mrb[4].mxu1 }
 0x1fc   : > { %v455_v30 = vadd.f32 %v678_v28, %v454_v29  ;;  %v729_v31 = vpop.f32.mrb[5].mxu1 }
 0x1fd   : > { %v457_v32 = vpop.f32.mrb[6].mxu1 }
 0x1fe   : > { %460 = vst [vmem:[%s295_s21] sm:$0xff] %v455_v30  ;;  %v461_v33 = vpack.c.bf16 %v455_v30, %v455_v30  ;;  %v730_v34 = vpop.f32.mrb[7].mxu1 }
 0x200   : > { %748 = vmatmul.mubr.bf16.vlgmr.msra.gmra.mrb[0].mxu0 %v461_v33 }
 0x2d3   : > { %v560_v35 = vpop.f32.mrb[0].mxu0 }
 0x2d4   : > { %566 = vst [vmem:[%s299_s25] sm:$0xff] %v560_v35  ;;  %v749_v36 = vpop.f32.mrb[1].mxu0 }
 0x2d5   : > { %v563_v37 = vpop.f32.mrb[2].mxu0 }
 0x2d6   : > { %v750_v38 = vpop.f32.mrb[3].mxu0 }
 0x2d7 PF: > { %s19_s24 = sadd.s32 1, %s830_s24  }
 0x2d8   : > { %p16_p3 = scmp.ge.s32.totalorder %s19_s24, 4  }
 0x2da   :  { %18 = sbr.rel (!%p16_p3) target bundleno = 1 (0x1), region = 91 }
 0x2e1   :  { %600 = vsyncpa [#allocation3], 1 }
 0x2e2   :  { %602 = vsyncpa [#allocation3 + $0x1], 1 }

// kernel: _lambda_.3
= control target key start
LH: loop header
LB: loop body
LE: loop exit
PB: predicated region body
PF: predicated region fallthrough
CT: control target
= control target key end

     0   :  { %s850_s15 = smov 0   ;;  %s852_s16 = smov 0   ;;  %s932_s0 = inlined_call_operand.vmem [shape: f32[16,128], index: 0, kind: input, shape index: {}]   ;;  %s933_s1 = inlined_call_operand.vmem [shape: bf16[8,16,128], index: 1, kind: input, shape index: {}]   ;;  %s934_s2 = inlined_call_operand.vmem [shape: bf16[8,16,128], index: 2, kind: input, shape index: {}]   ;;  %s935_s3 = inlined_call_operand.vmem [shape: f32[16,8], index: 3, kind: input, shape index: {}]   ;;  %s936_s4 = inlined_call_operand.vmem [shape: f32[16,128], index: 4, kind: output, shape index: {}]  }
   0x1   :  { %s854_s17 = smov 0  }
   0x2 LB: > { %s682_s18 = sadd.s32 4294967295, %s815_s17   ;;  %s867_s19 = sadd.s32 1, %s815_s17   ;;  %s815_s17 = sphi %s854_s17, %s940_s17   ;;  %s811_s16 = sphi %s852_s16, %s939_s16   ;;  %s807_s15 = sphi %s850_s15, %s938_s15  }
   0x3   : > { %s44_s20 = ssub.s32 %s815_s17, %s867_s19  ;;  %s47_s21 = sadd.s32 1, %s811_s16 }
   0x4   : > { %p45_p0 = scmp.eq.s32.totalorder %s44_s20, 0  ;;  %p54_p1 = scmp.ne.s32.totalorder %s811_s16, %s807_s15 }
   0x5   : > { %p55_p2 = scmp.eq.s32.totalorder %s815_s17, 0  ;;  %p685_p4 = scmp.ge.s32.totalorder %s815_s17, 2 }
   0x6   : > { %s876_s22 = scalar_select %p45_p0, %s811_s16, %s47_s21  }
   0x7   : > { %p878_p3 = por %p55_p2, %p54_p1  ;;  %158 = sbr.rel (%p685_p4) target bundleno = 32 (0x20), region = 16 }
   0xe   : > { %168 = sbr.rel (!%p878_p3) target bundleno = 23 (0x17), region = 24  ;;  %s170_s24 = sand.u32 (%p878_p3), 1, %s811_s16  }
   0xf   : > { %s687_s25 = sshll.u32 (%p878_p3), %s815_s17, 2  ;;  %s686_s26 = sshll.u32 (%p878_p3), %s170_s24, 5 }
  0x10   : > { %s174_s29 = scalar_lea.vmem (%p878_p3), %s933_s1, %s687_s25  ;;  %s172_s30 = scalar_lea.vmem (%p878_p3), [#allocation2], %s686_s26 }
  0x11   : > { %v190_v0 = vld [vmem:[%s174_s29] sm:$0xf] (%p878_p3)  ;;  %v192_v1 = vld [vmem:[%s174_s29 + $0x8] sm:$0xf] (%p878_p3)  ;;  %v194_v2 = vld [vmem:[%s174_s29 + $0x10] sm:$0xf] (%p878_p3) }
  0x12   : > { %191 = vst [vmem:[%s172_s30] sm:$0xf] (%p878_p3), %v190_v0  ;;  %193 = vst [vmem:[%s172_s30 + $0x4] sm:$0xf] (%p878_p3), %v192_v1  ;;  %v196_v3 = vld [vmem:[%s174_s29 + $0x18] sm:$0xf] (%p878_p3) }
  0x13   : > { %v198_v4 = vld [vmem:[%s174_s29 + $0x20] sm:$0xf] (%p878_p3)  ;;  %195 = vst [vmem:[%s172_s30 + $0x8] sm:$0xf] (%p878_p3), %v194_v2  ;;  %197 = vst [vmem:[%s172_s30 + $0xc] sm:$0xf] (%p878_p3), %v196_v3 }
  0x14   : > { %199 = vst [vmem:[%s172_s30 + $0x10] sm:$0xf] (%p878_p3), %v198_v4  ;;  %v200_v5 = vld [vmem:[%s174_s29 + $0x28] sm:$0xf] (%p878_p3)  ;;  %v202_v6 = vld [vmem:[%s174_s29 + $0x30] sm:$0xf] (%p878_p3) }
  0x15   : > { %v204_v7 = vld [vmem:[%s174_s29 + $0x38] sm:$0xf]  ;;  %201 = vst [vmem:[%s172_s30 + $0x14] sm:$0xf] %v200_v5  ;;  %203 = vst [vmem:[%s172_s30 + $0x18] sm:$0xf] %v202_v6 }
  0x16   : > { %205 = vst [vmem:[%s172_s30 + $0x1c] sm:$0xf] %v204_v7 }
  0x17 PF: > { %244 = sbr.rel (!%p878_p3) target bundleno = 32 (0x20), region = 65  ;;  %s246_s5 = sand.u32 (%p878_p3), 1, %s811_s16  }
  0x18   : > { %s689_s6 = sshll.u32 (%p878_p3), %s815_s17, 2  ;;  %s688_s7 = sshll.u32 (%p878_p3), %s246_s5, 5 }
  0x19   : > { %s250_s10 = scalar_lea.vmem (%p878_p3), %s934_s2, %s689_s6  ;;  %s248_s11 = scalar_lea.vmem (%p878_p3), [#allocation3], %s688_s7 }
  0x1a   : > { %v266_v8 = vld [vmem:[%s250_s10] sm:$0xf] (%p878_p3)  ;;  %v268_v9 = vld [vmem:[%s250_s10 + $0x8] sm:$0xf] (%p878_p3)  ;;  %v270_v10 = vld [vmem:[%s250_s10 + $0x10] sm:$0xf] (%p878_p3) }
  0x1b   : > { %267 = vst [vmem:[%s248_s11] sm:$0xf] (%p878_p3), %v266_v8  ;;  %269 = vst [vmem:[%s248_s11 + $0x4] sm:$0xf] (%p878_p3), %v268_v9  ;;  %v272_v11 = vld [vmem:[%s250_s10 + $0x18] sm:$0xf] (%p878_p3) }
  0x1c   : > { %v274_v12 = vld [vmem:[%s250_s10 + $0x20] sm:$0xf] (%p878_p3)  ;;  %271 = vst [vmem:[%s248_s11 + $0x8] sm:$0xf] (%p878_p3), %v270_v10  ;;  %273 = vst [vmem:[%s248_s11 + $0xc] sm:$0xf] (%p878_p3), %v272_v11 }
  0x1d   : > { %275 = vst [vmem:[%s248_s11 + $0x10] sm:$0xf] (%p878_p3), %v274_v12  ;;  %v276_v13 = vld [vmem:[%s250_s10 + $0x28] sm:$0xf] (%p878_p3)  ;;  %v278_v14 = vld [vmem:[%s250_s10 + $0x30] sm:$0xf] (%p878_p3) }
  0x1e   : > { %v280_v15 = vld [vmem:[%s250_s10 + $0x38] sm:$0xf]  ;;  %277 = vst [vmem:[%s248_s11 + $0x14] sm:$0xf] %v276_v13  ;;  %279 = vst [vmem:[%s248_s11 + $0x18] sm:$0xf] %v278_v14 }
  0x1f   : > { %281 = vst [vmem:[%s248_s11 + $0x1c] sm:$0xf] %v280_v15 }
  0x20 PF: > { %p690_p5 = scmp.ge.s32.totalorder %s815_s17, 1  ;;  %p326_p6 = scmp.lt.s32.totalorder %s815_s17, 3 }
  0x22   : > { %p327_p7 = pnand %p690_p5, %p326_p6 }
  0x23   : > { %s333_s12 = sand.u32 (!%p327_p7), 1, %s807_s15   ;;  %p376_p8 = scmp.lt.s32.totalorder (!%p327_p7), %s682_s18, 1  ;;  %v817_v37 = vmov (!%p327_p7), 1   ;;  %v818_v38 = vmov (!%p327_p7), 0  }
  0x24   : > { %330 = sbr.rel (%p327_p7) target bundleno = 376 (0x178), region = 110  ;;  %s902_s13 = sshll.u32 (!%p327_p7), %s333_s12, 5  ;;  %753 = vset.pattern.permute.xlu1 (!%p327_p7), %v817_v37  ;;  %752 = vset.pattern.permute.xlu0 (!%p327_p7), %v818_v38 }
  0x25   : > { %s335_s14 = scalar_lea.vmem (!%p327_p7), [#allocation2], %s902_s13  ;;  %s342_s25 = scalar_lea.vmem (!%p327_p7), [#allocation3], %s902_s13 }
  0x26   : > { %v697_v16 = vld [vmem:[%s335_s14 + $0x4] sm:$0xff] (!%p327_p7)   ;;  %v390_v17 = vld [vmem:[%s335_s14] ss:$28 sps:$4 sm:$0xff] (!%p327_p7)   ;;  %v703_v18 = vld [vmem:[%s335_s14 + $0xc] sm:$0xff] (!%p327_p7)  }
  0x27   : > { %v414_v19 = vunpack.c.l.bf16 (!%p327_p7), %v697_v16  ;;  %v391_v20 = vunpack.c.l.bf16 (!%p327_p7), %v390_v17  ;;  %v438_v21 = vunpack.c.h.bf16 (!%p327_p7), %v697_v16  ;;  %v462_v22 = vunpack.c.l.bf16 (!%p327_p7), %v703_v18  ;;  %v709_v29 = vld [vmem:[%s335_s14 + $0x14] sm:$0xff] (!%p327_p7)   ;;  %v699_v38 = vld [vmem:[%s342_s25 + $0x4] sm:$0xff] (!%p327_p7)  }
  0x28   : > { %v486_v28 = vunpack.c.h.bf16 (!%p327_p7), %v703_v18  ;;  %v510_v31 = vunpack.c.l.bf16 (!%p327_p7), %v709_v29  ;;  %v534_v33 = vunpack.c.h.bf16 (!%p327_p7), %v709_v29  ;;  %v558_v35 = vunpack.c.h.bf16 (!%p327_p7), %v390_v17 }
  0x29   : > { %v822_v29 = vmov (!%p327_p7), 4  }
  0x2b   : > { %s942_s18 = smov (!%p376_p8, %s682_s18), 1 }
  0x2c   : > { %s907_s20 = sshll.u32 %s942_s18, 3 }
  0x2d   : > { %s379_s15 = scalar_lea.vmem %s932_s0, %s907_s20  ;;  %s383_s24 = scalar_lea.vmem %s935_s3, %s907_s20 }
  0x2e   : > { %v388_v23 = vld [vmem:[%s379_s15] sm:$0xff]  ;;  %s387_s28 = scalar_lea.vmem %s936_s4, %s907_s20 }
  0x2f   : > { %v415_v24 = vmul.f32 %v414_v19, %v388_v23  ;;  %v392_v25 = vmul.f32 %v391_v20, %v388_v23  ;;  %v439_v26 = vmul.f32 %v438_v21, %v388_v23  ;;  %v463_v27 = vmul.f32 %v462_v22, %v388_v23  ;;  %v389_v3 = vld [vmem:[%s383_s24] sm:$0xff] }
  0x30   : > { %v487_v30 = vmul.f32 %v486_v28, %v388_v23  ;;  %v511_v32 = vmul.f32 %v510_v31, %v388_v23  ;;  %v535_v34 = vmul.f32 %v534_v33, %v388_v23  ;;  %v559_v36 = vmul.f32 %v558_v35, %v388_v23 }
  0x31   : > { %416 = vadd.xlane.f32.xlu1 %v415_v24  ;;  %393 = vadd.xlane.f32.xlu0 %v392_v25  ;;  %v819_v21 = vmov 3   ;;  %v820_v23 = vmov 2  }
  0x35   : > { %440 = vadd.xlane.f32.xlu1 %v439_v26  ;;  %464 = vadd.xlane.f32.xlu0 %v463_v27  ;;  %v821_v27 = vmov 5  }
  0x39   : > { %488 = vadd.xlane.f32.xlu1 %v487_v30 }
  0x3d   : > { %512 = vadd.xlane.f32.xlu1 %v511_v32 }
  0x41   : > { %536 = vadd.xlane.f32.xlu1 %v535_v34  ;;  %v823_v34 = vmov 7  }
  0x45   : > { %560 = vadd.xlane.f32.xlu1 %v559_v36  ;;  %v824_v36 = vmov 6  }
  0xbe   : > { %v417_v39 = vpop.xlane.xlu1 %416  ;;  %v394_v40 = vpop.xlane.xlu0 %393 }
  0xbf   : > { %v698_v41 = vmul.f32 -1.442695, %v417_v39  ;;  %v696_v42 = vmul.f32 -1.442695, %v394_v40 }
  0xc1   : > { %761 = vpow2.f32 %v698_v41 }
  0xc2   : > { %763 = vpow2.f32 %v696_v42  ;;  %v441_v43 = vpop.xlane.xlu1 %440  ;;  %v465_v44 = vpop.xlane.xlu0 %464 }
  0xc3   : > { %v701_v45 = vmul.f32 -1.442695, %v441_v43  ;;  %v704_v46 = vmul.f32 -1.442695, %v465_v44 }
  0xc5   : > { %765 = vpow2.f32 %v701_v45 }
  0xc6   : > { %767 = vpow2.f32 %v704_v46  ;;  %v489_v47 = vpop.xlane.xlu1 %488  ;;  %v452_v46 = vunpack.c.h.bf16 %v699_v38 }
  0xc7   : > { %v707_v48 = vmul.f32 -1.442695, %v489_v47 }
  0xc9   : > { %769 = vpow2.f32 %v707_v48 }
  0xca   : > { %v513_v49 = vpop.xlane.xlu1 %512 }
  0xcb   : > { %v762_v50 = vpop.eup %761  ;;  %v710_v51 = vmul.f32 -1.442695, %v513_v49 }
  0xcc   : > { %v764_v52 = vpop.eup %763  ;;  %v421_v53 = vadd.f32 1.0, %v762_v50 }
  0xcd   : > { %v398_v54 = vadd.f32 1.0, %v764_v52  ;;  %771 = vpow2.f32 %v710_v51 }
  0xce   : > { %773 = vrcp.f32 %v421_v53  ;;  %v537_v55 = vpop.xlane.xlu1 %536 }
  0xcf   : > { %v766_v56 = vpop.eup %765  ;;  %775 = vrcp.f32 %v398_v54  ;;  %v713_v57 = vmul.f32 -1.442695, %v537_v55 }
  0xd0   : > { %v768_v58 = vpop.eup %767  ;;  %v445_v59 = vadd.f32 1.0, %v766_v56 }
  0xd1   : > { %v469_v60 = vadd.f32 1.0, %v768_v58  ;;  %777 = vpow2.f32 %v713_v57 }
  0xd2   : > { %779 = vrcp.f32 %v445_v59  ;;  %v561_v61 = vpop.xlane.xlu1 %560 }
  0xd3   : > { %v770_v62 = vpop.eup %769  ;;  %781 = vrcp.f32 %v469_v60  ;;  %v716_v63 = vmul.f32 -1.442695, %v561_v61 }
  0xd4   : > { %v493_v0 = vadd.f32 1.0, %v770_v62 }
  0xd5   : > { %783 = vpow2.f32 %v716_v63 }
  0xd6   : > { %785 = vrcp.f32 %v493_v0 }
  0xd7   : > { %v772_v1 = vpop.eup %771 }
  0xd8   : > { %v774_v2 = vpop.eup %773  ;;  %v517_v4 = vadd.f32 1.0, %v772_v1 }
  0xd9   : > { %v776_v5 = vpop.eup %775  ;;  %v424_v6 = vmul.f32 %v774_v2, %v417_v39  ;;  %v403_v39 = vld [vmem:[%s342_s25] ss:$28 sps:$4 sm:$0xff]  }
  0xda   : > { %v401_v7 = vmul.f32 %v776_v5, %v394_v40  ;;  %787 = vrcp.f32 %v517_v4  ;;  %v428_v40 = vunpack.c.l.bf16 %v699_v38  ;;  %v404_v41 = vunpack.c.l.bf16 %v403_v39 }
  0xdb   : > { %v778_v8 = vpop.eup %777  ;;  %v425_v9 = vmul.f32 %v424_v6, %v389_v3 }
  0xdc   : > { %v780_v10 = vpop.eup %779  ;;  %v402_v11 = vmul.f32 %v401_v7, %v389_v3  ;;  %v541_v12 = vadd.f32 1.0, %v778_v8 }
  0xdd   : > { %v782_v13 = vpop.eup %781  ;;  %v448_v14 = vmul.f32 %v780_v10, %v441_v43  ;;  %431 = vperm.xlu1 %753, %v425_v9  }
  0xde   : > { %v472_v15 = vmul.f32 %v782_v13, %v465_v44  ;;  %789 = vrcp.f32 %v541_v12  ;;  %407 = vperm.xlu0 %752, %v402_v11  }
  0xdf   : > { %v784_v16 = vpop.eup %783  ;;  %v449_v17 = vmul.f32 %v448_v14, %v389_v3 }
  0xe0   : > { %v786_v18 = vpop.eup %785  ;;  %v473_v19 = vmul.f32 %v472_v15, %v389_v3  ;;  %v565_v20 = vadd.f32 1.0, %v784_v16 }
  0xe1   : > { %755 = vset.pattern.permute.xlu1 %v819_v21  ;;  %v496_v22 = vmul.f32 %v786_v18, %v489_v47  ;;  %v705_v47 = vld [vmem:[%s342_s25 + $0xc] sm:$0xff]  }
  0xe2   : > { %791 = vrcp.f32 %v565_v20  ;;  %754 = vset.pattern.permute.xlu0 %v820_v23  ;;  %479 = vperm.xlu1 %755, %v473_v19   ;;  %v476_v50 = vunpack.c.l.bf16 %v705_v47  ;;  %v500_v54 = vunpack.c.h.bf16 %v705_v47 }
  0xe3   : > { %455 = vperm.xlu0 %754, %v449_v17   ;;  %v497_v26 = vmul.f32 %v496_v22, %v389_v3 }
  0xe4   : > { %v788_v24 = vpop.eup %787 }
  0xe5   : > { %v520_v25 = vmul.f32 %v788_v24, %v513_v49 }
  0xe6   : > { %757 = vset.pattern.permute.xlu1 %v821_v27 }
  0xe7   : > { %v521_v28 = vmul.f32 %v520_v25, %v389_v3  ;;  %756 = vset.pattern.permute.xlu0 %v822_v29 }
  0xe8   : > { %v790_v30 = vpop.eup %789  ;;  %503 = vperm.xlu0 %756, %v497_v26  }
  0xe9   : > { %v544_v31 = vmul.f32 %v790_v30, %v537_v55  ;;  %527 = vperm.xlu1 %757, %v521_v28   ;;  %v711_v55 = vld [vmem:[%s342_s25 + $0x14] sm:$0xff]  }
  0xea   : > { %v548_v62 = vunpack.c.h.bf16 %v711_v55 }
  0xeb   : > { %v545_v32 = vmul.f32 %v544_v31, %v389_v3 }
  0xec   : > { %v792_v33 = vpop.eup %791  ;;  %760 = vset.pattern.permute.xlu0 %v823_v34 }
  0xed   : > { %v568_v35 = vmul.f32 %v792_v33, %v561_v61  ;;  %758 = vset.pattern.permute.xlu1 %v824_v36  ;;  %v524_v61 = vunpack.c.l.bf16 %v711_v55 }
  0xee   : > { %551 = vperm.xlu1 %758, %v545_v32  }
  0xef   : > { %v569_v37 = vmul.f32 %v568_v35, %v389_v3  ;;  %v572_v3 = vunpack.c.h.bf16 %v403_v39 }
  0xf2   : > { %759 = vset.pattern.permute.xlu1 %v823_v34 }
  0xf3   : > { %575 = vperm.xlu1 %759, %v569_v37  }
 0x15c   : > { %v432_v42 = vpop.permute.xlu1 %431 }
 0x15d   : > { %v408_v43 = vpop.permute.xlu0 %407  ;;  %v434_v44 = vmul.f32 %v432_v42, %v428_v40 }
 0x15e   : > { %v410_v45 = vmul.f32 %v408_v43, %v404_v41 }
 0x160   : > { %v435_v49 = vadd.f32 %v434_v44, %v410_v45 }
 0x161   : > { %v480_v52 = vpop.permute.xlu1 %479 }
 0x162   : > { %v456_v48 = vpop.permute.xlu0 %455  ;;  %v482_v56 = vmul.f32 %v480_v52, %v476_v50 }
 0x163   : > { %v458_v51 = vmul.f32 %v456_v48, %v452_v46 }
 0x165   : > { %v459_v53 = vadd.f32 %v458_v51, %v435_v49 }
 0x167   : > { %v504_v57 = vpop.permute.xlu0 %503  ;;  %v483_v59 = vadd.f32 %v482_v56, %v459_v53 }
 0x168   : > { %v528_v58 = vpop.permute.xlu1 %527  ;;  %v506_v60 = vmul.f32 %v504_v57, %v500_v54 }
 0x169   : > { %v530_v0 = vmul.f32 %v528_v58, %v524_v61 }
 0x16a   : > { %v507_v63 = vadd.f32 %v506_v60, %v483_v59 }
 0x16c   : > { %v531_v4 = vadd.f32 %v530_v0, %v507_v63 }
 0x16d   : > { %v552_v1 = vpop.permute.xlu1 %551 }
 0x16e   : > { %v554_v2 = vmul.f32 %v552_v1, %v548_v62 }
 0x170   : > { %v555_v6 = vadd.f32 %v554_v2, %v531_v4 }
 0x172   : > { %v576_v5 = vpop.permute.xlu1 %575 }
 0x173   : > { %v578_v7 = vmul.f32 %v576_v5, %v572_v3 }
 0x175   : > { %v579_v8 = vadd.f32 %v578_v7, %v555_v6 }
 0x177   : > { %580 = vst [vmem:[%s387_s28] sm:$0xff] %v579_v8 }
 0x178 PF: > { %p11_p9 = scmp.ge.s32.totalorder %s867_s19, 4   ;;  %s938_s15 = smov %s811_s16 }
 0x179   : > { %s939_s16 = smov %s876_s22  ;;  %s940_s17 = smov %s867_s19 }
 0x17a   :  { %13 = sbr.rel (!%p11_p9) target bundleno = 2 (0x2), region = 181 }

</bundles_post_ra>
